<compile_context>
chip_gen: v5e
topology: v5e:2x2
jax: 0.10.0
libtpu: 0.0.40
codegen_flags: <defaults>
</compile_context>

<pallas_src>
import jax
import jax.numpy as jnp
from jax.experimental import pallas as pl
from jax.experimental.pallas import tpu as pltpu


# --------------------------------------------------------------------------
# Kernel
# --------------------------------------------------------------------------
def mlp_kernel(x_ref,
               w1_ref, b1_ref,
               w2_ref, b2_ref,
               w3_ref, b3_ref,
               w4_ref, b4_ref,
               o_ref):
    """One batch tile of the MLP forward (eval-mode BN pre-folded into weights)."""
    h = x_ref[...].astype(jnp.bfloat16)                 # in-kernel cast (free VPU filler)

    h = jnp.dot(h, w1_ref[...], preferred_element_type=jnp.float32) + b1_ref[...]
    h = jnp.maximum(h, 0.0).astype(jnp.bfloat16)

    h = jnp.dot(h, w2_ref[...], preferred_element_type=jnp.float32) + b2_ref[...]
    h = jnp.maximum(h, 0.0).astype(jnp.bfloat16)

    h = jnp.dot(h, w3_ref[...], preferred_element_type=jnp.float32) + b3_ref[...]
    h = jnp.maximum(h, 0.0).astype(jnp.bfloat16)

    h = jnp.dot(h, w4_ref[...], preferred_element_type=jnp.float32) + b4_ref[...]
    # torch.abs(ReLU(x)) == ReLU(x): abs dropped as redundant.
    o_ref[...] = jnp.maximum(h, 0.0).astype(o_ref.dtype)


# --------------------------------------------------------------------------
# Parameter preparation (one-time, hoisted out of the forward call)
# --------------------------------------------------------------------------
def fold_bn(gamma, beta, mean, var, eps=1e-5):
    """Fold eval-mode BatchNorm1d into per-feature scale/shift (1-D)."""
    scale = gamma / jnp.sqrt(var + eps)
    shift = beta - mean * scale
    return scale, shift


def fold_bn_into_next_linear(bn, w_next, b_next):
    """(h*s + t) @ W + b  ==  h @ (s[:,None]*W) + (t @ W + b)   (exact, eval-mode BN)."""
    s, t = fold_bn(*bn)
    return s[:, None] * w_next, b_next + t @ w_next


def _round_up(x, m):
    return (x + m - 1) // m * m


def prepare_params(params, *, pad_hidden3=True):
    """Fold BN, pad the 64-wide hidden layer to 128 lanes, cast MXU operands to bf16.

    Call ONCE per parameter set; the returned pytree is what the forward consumes.
    """
    (w1, b1, bn1), (w2, b2, bn2), (w3, b3, bn3), (w4, b4) = params

    # Fold each eval-mode BatchNorm into the following Linear layer (exact).
    w2f, b2f = fold_bn_into_next_linear(bn1, w2, b2)
    w3f, b3f = fold_bn_into_next_linear(bn2, w3, b3)
    w4f, b4f = fold_bn_into_next_linear(bn3, w4, b4)

    if pad_hidden3:
        # Zero-pad hidden3 (64 -> 128): zero cols + zero bias -> ReLU(0)=0,
        # matched by zero rows in w4f, so the result is exact.
        h3 = w3f.shape[1]
        h3p = _round_up(h3, 128)
        if h3p != h3:
            w3f = jnp.pad(w3f, ((0, 0), (0, h3p - h3)))
            b3f = jnp.pad(b3f, ((0, h3p - h3),))
            w4f = jnp.pad(w4f, ((0, h3p - h3), (0, 0)))

    weights = tuple(jnp.asarray(w, jnp.bfloat16) for w in (w1, w2f, w3f, w4f))
    biases = tuple(jnp.asarray(b, jnp.float32)[None, :] for b in (b1, b2f, b3f, b4f))
    return weights, biases


# --------------------------------------------------------------------------
# Forward wrapper
# --------------------------------------------------------------------------
def trainable_mlp_forward(x, prepared, *, block_rows=2048):
    """Batch-gridded Pallas forward. `prepared` comes from prepare_params()."""
    weights, biases = prepared
    w1b, w2b, w3b, w4b = weights
    b1f, b2f, b3f, b4f = biases

    B, in_dim = x.shape
    out_dim = w4b.shape[1]

    # Balanced batch tiles; force >= 2 grid steps when B permits so the
    # "parallel" axis shards across v7x's two TensorCores.
    min_tiles = min(2, pl.cdiv(B, 8))
    n_tiles = max(pl.cdiv(B, block_rows), min_tiles)
    tm = _round_up(pl.cdiv(B, n_tiles), 8)
    b_pad = n_tiles * tm
    if b_pad != B:
        x = jnp.pad(x, ((0, b_pad - B), (0, 0)))
    x = x.astype(jnp.float32)            # bf16 cast happens inside the kernel

    grid = (n_tiles,)

    def weight_spec(arr):
        # Constant index_map -> stays VMEM-resident across the whole grid.
        return pl.BlockSpec(arr.shape, lambda i: (0, 0))

    in_specs = [
        pl.BlockSpec((tm, in_dim), lambda i: (i, 0)),     # batch-tiled activations
        weight_spec(w1b), weight_spec(b1f),
        weight_spec(w2b), weight_spec(b2f),
        weight_spec(w3b), weight_spec(b3f),
        weight_spec(w4b), weight_spec(b4f),
    ]
    # Output: bf16, no lane padding (block last dim == full array last dim is legal).
    out_specs = pl.BlockSpec((tm, out_dim), lambda i: (i, 0))

    h1, h2, h3 = w1b.shape[1], w2b.shape[1], w3b.shape[1]
    flops = 2 * b_pad * (in_dim * h1 + h1 * h2 + h2 * h3 + h3 * out_dim)
    bytes_accessed = (b_pad * in_dim * 4
                      + sum(int(w.size) * 2 for w in weights)
                      + sum(int(b.size) * 4 for b in biases)
                      + b_pad * out_dim * 2)
    cost = pl.CostEstimate(flops=int(flops), transcendentals=0,
                           bytes_accessed=int(bytes_accessed))

    vmem_limit = (48 if tm > 2048 else 32) * 1024 * 1024

    out = pl.pallas_call(
        mlp_kernel,
        out_shape=jax.ShapeDtypeStruct((b_pad, out_dim), jnp.bfloat16),
        grid=grid,
        in_specs=in_specs,
        out_specs=out_specs,
        compiler_params=pltpu.CompilerParams(
            dimension_semantics=("parallel",),            # megacore-shardable on v7x
            vmem_limit_bytes=vmem_limit),
        cost_estimate=cost,
    )(x, w1b, b1f, w2b, b2f, w3b, b3f, w4b, b4f)

    return out[:B]


# --------------------------------------------------------------------------
# Parameter init + references
# --------------------------------------------------------------------------
def init_params(key, in_dim, out_dim):
    """Deterministic synthetic parameter init (mirrors the PyTorch layer shapes)."""
    dims = [in_dim, 128, 512, 64, out_dim]
    keys = jax.random.split(key, 16)
    ki = iter(range(16))

    def linear(k_w, k_b, fan_in, fan_out):
        bound = 1.0 / jnp.sqrt(fan_in)
        # stored as [fan_in, fan_out] (transposed vs. PyTorch's [out, in])
        w = jax.random.uniform(k_w, (fan_in, fan_out), jnp.float32, -bound, bound)
        b = jax.random.uniform(k_b, (fan_out,), jnp.float32, -bound, bound)
        return w, b

    def bn(k, feats):
        k1, k2, k3 = jax.random.split(k, 3)
        gamma = 1.0 + 0.1 * jax.random.normal(k1, (feats,), jnp.float32)
        beta = 0.1 * jax.random.normal(k2, (feats,), jnp.float32)
        mean = 0.05 * jax.random.normal(k3, (feats,), jnp.float32)
        var = jnp.ones((feats,), jnp.float32)
        return gamma, beta, mean, var

    w1, b1 = linear(keys[next(ki)], keys[next(ki)], dims[0], dims[1])
    bn1 = bn(keys[next(ki)], dims[1])
    w2, b2 = linear(keys[next(ki)], keys[next(ki)], dims[1], dims[2])
    bn2 = bn(keys[next(ki)], dims[2])
    w3, b3 = linear(keys[next(ki)], keys[next(ki)], dims[2], dims[3])
    bn3 = bn(keys[next(ki)], dims[3])
    w4, b4 = linear(keys[next(ki)], keys[next(ki)], dims[3], dims[4])

    return ((w1, b1, bn1), (w2, b2, bn2), (w3, b3, bn3), (w4, b4))


def reference_forward_f32(x, params):
    """Pure-JAX f32 reference with the original module semantics (incl. abs)."""
    (w1, b1, bn1), (w2, b2, bn2), (w3, b3, bn3), (w4, b4) = params
    h = x
    for (w, b, bnp) in ((w1, b1, bn1), (w2, b2, bn2), (w3, b3, bn3)):
        h = jnp.maximum(h @ w + b, 0.0)
        s, t = fold_bn(*bnp)
        h = h * s[None, :] + t[None, :]
    h = jnp.maximum(h @ w4 + b4, 0.0)
    return jnp.abs(h)


def reference_forward_matched(x, prepared):
    """Pure-JAX reference replicating the kernel's folding + bf16/f32 numerics."""
    (w1b, w2b, w3b, w4b), (b1f, b2f, b3f, b4f) = prepared
    h = x.astype(jnp.bfloat16)
    for w, b in ((w1b, b1f), (w2b, b2f), (w3b, b3f)):
        h = jnp.dot(h, w, preferred_element_type=jnp.float32) + b
        h = jnp.maximum(h, 0.0).astype(jnp.bfloat16)
    h = jnp.dot(h, w4b, preferred_element_type=jnp.float32) + b4f
    return jnp.maximum(h, 0.0).astype(jnp.bfloat16)


# --------------------------------------------------------------------------
if __name__ == "__main__":
    # Synthetic config: |wavelengths| = 16 -> in_dim = 32,
    # layers.max = 6, material_embedding.dim = 3 -> output_size = (6+2)*(3+1) = 32.
    n_wavelengths = 16
    in_dim = 2 * n_wavelengths
    output_size = (6 + 2) * (3 + 1)
    batch = 8

    key = jax.random.PRNGKey(0)
    k_x, k_p = jax.random.split(key)
    x = jax.random.normal(k_x, (batch, in_dim), jnp.float32)
    params = init_params(k_p, in_dim, output_size)

    prepared = prepare_params(params)          # one-time parameter prep
    out = trainable_mlp_forward(x, prepared)
    out = jax.block_until_ready(out)
    assert out.shape == (batch, output_size)
    out_f32 = out.astype(jnp.float32)

    # Matched-precision check (same folding / bf16 MXU / bf16 output path).
    ref_matched = reference_forward_matched(x, prepared).astype(jnp.float32)
    assert jnp.allclose(out_f32, ref_matched, atol=2e-2, rtol=2e-2), \
        "mismatch vs matched-precision JAX reference"

    # Loose check vs the original-semantics f32 reference (bf16 rounding only).
    ref_f32 = reference_forward_f32(x, params)
    assert jnp.allclose(out_f32, ref_f32, atol=1e-1, rtol=1e-1), \
        "mismatch vs f32 JAX reference"

    print("KERNEL_OK")
</pallas_src>

<mosaic_0001>
module attributes {stable_mosaic.version = 11 : i64} {
  func.func @mlp_kernel(%arg0: i32, %arg1: memref<8x32xf32, #tpu.memory_space<vmem>>, %arg2: memref<32x128xbf16, #tpu.memory_space<vmem>>, %arg3: memref<1x128xf32, #tpu.memory_space<vmem>>, %arg4: memref<128x512xbf16, #tpu.memory_space<vmem>>, %arg5: memref<1x512xf32, #tpu.memory_space<vmem>>, %arg6: memref<512x128xbf16, #tpu.memory_space<vmem>>, %arg7: memref<1x128xf32, #tpu.memory_space<vmem>>, %arg8: memref<128x32xbf16, #tpu.memory_space<vmem>>, %arg9: memref<1x32xf32, #tpu.memory_space<vmem>>, %arg10: memref<8x32xbf16, #tpu.memory_space<vmem>>) attributes {dimension_semantics = [#tpu.dimension_semantics<parallel>], iteration_bounds = array<i64: 1>, scalar_prefetch = 0 : i64, scratch_operands = 0 : i64, tpu.core_type = #tpu.core_type<tc>, window_params = [{transform_indices = @transform_0, window_bounds = array<i64: 8, 32>}, {pipeline_mode = #tpu.pipeline_mode<synchronous>, transform_indices = @transform_1, window_bounds = array<i64: 32, 128>}, {pipeline_mode = #tpu.pipeline_mode<synchronous>, transform_indices = @transform_2, window_bounds = array<i64: 1, 128>}, {pipeline_mode = #tpu.pipeline_mode<synchronous>, transform_indices = @transform_3, window_bounds = array<i64: 128, 512>}, {pipeline_mode = #tpu.pipeline_mode<synchronous>, transform_indices = @transform_4, window_bounds = array<i64: 1, 512>}, {pipeline_mode = #tpu.pipeline_mode<synchronous>, transform_indices = @transform_5, window_bounds = array<i64: 512, 128>}, {pipeline_mode = #tpu.pipeline_mode<synchronous>, transform_indices = @transform_6, window_bounds = array<i64: 1, 128>}, {pipeline_mode = #tpu.pipeline_mode<synchronous>, transform_indices = @transform_7, window_bounds = array<i64: 128, 32>}, {pipeline_mode = #tpu.pipeline_mode<synchronous>, transform_indices = @transform_8, window_bounds = array<i64: 1, 32>}, {transform_indices = @transform_9, window_bounds = array<i64: 8, 32>}]} {
    %c0 = arith.constant 0 : index
    %c0_0 = arith.constant 0 : index
    %0 = vector.load %arg1[%c0, %c0_0] : memref<8x32xf32, #tpu.memory_space<vmem>>, vector<8x32xf32>
    %1 = arith.truncf %0 : vector<8x32xf32> to vector<8x32xbf16>
    %c0_1 = arith.constant 0 : index
    %c0_2 = arith.constant 0 : index
    %2 = vector.load %arg2[%c0_1, %c0_2] : memref<32x128xbf16, #tpu.memory_space<vmem>>, vector<32x128xbf16>
    %cst = arith.constant dense<0.000000e+00> : vector<8x128xf32>
    %3 = tpu.matmul %1, %2, %cst {dimension_numbers = #tpu.dot_dimension_numbers<[1], [0], [0], [1], [0, 0, 1, 1], [], []>} : vector<8x32xbf16>, vector<32x128xbf16>, vector<8x128xf32> -> vector<8x128xf32>
    %c0_3 = arith.constant 0 : index
    %c0_4 = arith.constant 0 : index
    %4 = vector.load %arg3[%c0_3, %c0_4] : memref<1x128xf32, #tpu.memory_space<vmem>>, vector<1x128xf32>
    %5 = vector.broadcast %4 : vector<1x128xf32> to vector<8x128xf32>
    %6 = arith.addf %3, %5 : vector<8x128xf32>
    %cst_5 = arith.constant 0.000000e+00 : f32
    %7 = vector.broadcast %cst_5 : f32 to vector<8x128xf32>
    %8 = arith.maximumf %6, %7 : vector<8x128xf32>
    %9 = arith.truncf %8 : vector<8x128xf32> to vector<8x128xbf16>
    %c0_6 = arith.constant 0 : index
    %c0_7 = arith.constant 0 : index
    %10 = vector.load %arg4[%c0_6, %c0_7] : memref<128x512xbf16, #tpu.memory_space<vmem>>, vector<128x512xbf16>
    %cst_8 = arith.constant dense<0.000000e+00> : vector<8x512xf32>
    %11 = tpu.matmul %9, %10, %cst_8 {dimension_numbers = #tpu.dot_dimension_numbers<[1], [0], [0], [1], [0, 0, 1, 1], [], []>} : vector<8x128xbf16>, vector<128x512xbf16>, vector<8x512xf32> -> vector<8x512xf32>
    %c0_9 = arith.constant 0 : index
    %c0_10 = arith.constant 0 : index
    %12 = vector.load %arg5[%c0_9, %c0_10] : memref<1x512xf32, #tpu.memory_space<vmem>>, vector<1x512xf32>
    %13 = vector.broadcast %12 : vector<1x512xf32> to vector<8x512xf32>
    %14 = arith.addf %11, %13 : vector<8x512xf32>
    %cst_11 = arith.constant 0.000000e+00 : f32
    %15 = vector.broadcast %cst_11 : f32 to vector<8x512xf32>
    %16 = arith.maximumf %14, %15 : vector<8x512xf32>
    %17 = arith.truncf %16 : vector<8x512xf32> to vector<8x512xbf16>
    %c0_12 = arith.constant 0 : index
    %c0_13 = arith.constant 0 : index
    %18 = vector.load %arg6[%c0_12, %c0_13] : memref<512x128xbf16, #tpu.memory_space<vmem>>, vector<512x128xbf16>
    %cst_14 = arith.constant dense<0.000000e+00> : vector<8x128xf32>
    %19 = tpu.matmul %17, %18, %cst_14 {dimension_numbers = #tpu.dot_dimension_numbers<[1], [0], [0], [1], [0, 0, 1, 1], [], []>} : vector<8x512xbf16>, vector<512x128xbf16>, vector<8x128xf32> -> vector<8x128xf32>
    %c0_15 = arith.constant 0 : index
    %c0_16 = arith.constant 0 : index
    %20 = vector.load %arg7[%c0_15, %c0_16] : memref<1x128xf32, #tpu.memory_space<vmem>>, vector<1x128xf32>
    %21 = vector.broadcast %20 : vector<1x128xf32> to vector<8x128xf32>
    %22 = arith.addf %19, %21 : vector<8x128xf32>
    %cst_17 = arith.constant 0.000000e+00 : f32
    %23 = vector.broadcast %cst_17 : f32 to vector<8x128xf32>
    %24 = arith.maximumf %22, %23 : vector<8x128xf32>
    %25 = arith.truncf %24 : vector<8x128xf32> to vector<8x128xbf16>
    %c0_18 = arith.constant 0 : index
    %c0_19 = arith.constant 0 : index
    %26 = vector.load %arg8[%c0_18, %c0_19] : memref<128x32xbf16, #tpu.memory_space<vmem>>, vector<128x32xbf16>
    %cst_20 = arith.constant dense<0.000000e+00> : vector<8x32xf32>
    %27 = tpu.matmul %25, %26, %cst_20 {dimension_numbers = #tpu.dot_dimension_numbers<[1], [0], [0], [1], [0, 0, 1, 1], [], []>} : vector<8x128xbf16>, vector<128x32xbf16>, vector<8x32xf32> -> vector<8x32xf32>
    %c0_21 = arith.constant 0 : index
    %c0_22 = arith.constant 0 : index
    %28 = vector.load %arg9[%c0_21, %c0_22] : memref<1x32xf32, #tpu.memory_space<vmem>>, vector<1x32xf32>
    %29 = vector.broadcast %28 : vector<1x32xf32> to vector<8x32xf32>
    %30 = arith.addf %27, %29 : vector<8x32xf32>
    %cst_23 = arith.constant 0.000000e+00 : f32
    %31 = vector.broadcast %cst_23 : f32 to vector<8x32xf32>
    %32 = arith.maximumf %30, %31 : vector<8x32xf32>
    %33 = arith.truncf %32 : vector<8x32xf32> to vector<8x32xbf16>
    %c0_24 = arith.constant 0 : index
    %c0_25 = arith.constant 0 : index
    %34 = vector.load %arg10[%c0_24, %c0_25] : memref<8x32xbf16, #tpu.memory_space<vmem>>, vector<8x32xbf16>
    tpu.vector_store %arg10[%c0_24, %c0_25], %33 {strides = array<i32>} : memref<8x32xbf16, #tpu.memory_space<vmem>>, vector<8x32xbf16>,
    return
  }
  func.func @transform_0(%arg0: i32) -> (i32, i32) {
    %c0_i32 = arith.constant 0 : i32
    %c0_i32_0 = arith.constant 0 : i32
    return %arg0, %c0_i32 : i32, i32
  }
  func.func @transform_1(%arg0: i32) -> (i32, i32) {
    %c0_i32 = arith.constant 0 : i32
    %c0_i32_0 = arith.constant 0 : i32
    %c0_i32_1 = arith.constant 0 : i32
    return %c0_i32, %c0_i32_0 : i32, i32
  }
  func.func @transform_2(%arg0: i32) -> (i32, i32) {
    %c0_i32 = arith.constant 0 : i32
    %c0_i32_0 = arith.constant 0 : i32
    %c0_i32_1 = arith.constant 0 : i32
    return %c0_i32, %c0_i32_0 : i32, i32
  }
  func.func @transform_3(%arg0: i32) -> (i32, i32) {
    %c0_i32 = arith.constant 0 : i32
    %c0_i32_0 = arith.constant 0 : i32
    %c0_i32_1 = arith.constant 0 : i32
    return %c0_i32, %c0_i32_0 : i32, i32
  }
  func.func @transform_4(%arg0: i32) -> (i32, i32) {
    %c0_i32 = arith.constant 0 : i32
    %c0_i32_0 = arith.constant 0 : i32
    %c0_i32_1 = arith.constant 0 : i32
    return %c0_i32, %c0_i32_0 : i32, i32
  }
  func.func @transform_5(%arg0: i32) -> (i32, i32) {
    %c0_i32 = arith.constant 0 : i32
    %c0_i32_0 = arith.constant 0 : i32
    %c0_i32_1 = arith.constant 0 : i32
    return %c0_i32, %c0_i32_0 : i32, i32
  }
  func.func @transform_6(%arg0: i32) -> (i32, i32) {
    %c0_i32 = arith.constant 0 : i32
    %c0_i32_0 = arith.constant 0 : i32
    %c0_i32_1 = arith.constant 0 : i32
    return %c0_i32, %c0_i32_0 : i32, i32
  }
  func.func @transform_7(%arg0: i32) -> (i32, i32) {
    %c0_i32 = arith.constant 0 : i32
    %c0_i32_0 = arith.constant 0 : i32
    %c0_i32_1 = arith.constant 0 : i32
    return %c0_i32, %c0_i32_0 : i32, i32
  }
  func.func @transform_8(%arg0: i32) -> (i32, i32) {
    %c0_i32 = arith.constant 0 : i32
    %c0_i32_0 = arith.constant 0 : i32
    %c0_i32_1 = arith.constant 0 : i32
    return %c0_i32, %c0_i32_0 : i32, i32
  }
  func.func @transform_9(%arg0: i32) -> (i32, i32) {
    %c0_i32 = arith.constant 0 : i32
    %c0_i32_0 = arith.constant 0 : i32
    return %arg0, %c0_i32 : i32, i32
  }
}

</mosaic_0001>

<bundles_post_ra>
// kernel: tpu_custom_call.1
= control target key start
LH: loop header
LB: loop body
LE: loop exit
PB: predicated region body
PF: predicated region fallthrough
CT: control target
= control target key end

     0   :  { %14 = vsyncpa [#allocation3], 0  ;;  %s1357_s0 = inlined_call_operand.vmem [shape: f32[8,32], index: 0, kind: input, shape index: {}]   ;;  %s1358_s1 = inlined_call_operand.vmem [shape: bf16[32,128], index: 1, kind: input, shape index: {}]   ;;  %s1359_s2 = inlined_call_operand.vmem [shape: f32[1,128], index: 2, kind: input, shape index: {}]   ;;  %s1360_s3 = inlined_call_operand.hbm [shape: bf16[128,512], index: 3, kind: input, shape index: {}]   ;;  %s1361_s4 = inlined_call_operand.vmem [shape: f32[1,512], index: 4, kind: input, shape index: {}]   ;;  %s1362_s5 = inlined_call_operand.hbm [shape: bf16[512,128], index: 5, kind: input, shape index: {}]   ;;  %s1363_s6 = inlined_call_operand.vmem [shape: f32[1,128], index: 6, kind: input, shape index: {}]   ;;  %s1364_s7 = inlined_call_operand.vmem [shape: bf16[128,32], index: 7, kind: input, shape index: {}]   ;;  %s1365_s8 = inlined_call_operand.vmem [shape: f32[1,32], index: 8, kind: input, shape index: {}]   ;;  %s1366_s9 = inlined_call_operand.hbm [shape: bf16[8,32], index: 9, kind: output, shape index: {}]  }
   0x1   :  { %15 = vsyncpa [#allocation6], 0 }
   0x2   :  { %16 = vsyncpa [#allocation4], 0  ;;  %s27_s11 = sshll.u32 %s1360_s3, 4  ;;  %s1245_s12 = smov [#allocation2]   ;;  %s28_s11 = int_to_ptr.hbm [resolvable:$true] %s27_s11 }
   0x3   :  { %s29_s13 = sshll.u32 %s1245_s12, 4  ;;  %s42_s16 = sshll.u32 %s1362_s5, 4  ;;  %s30_s13 = int_to_ptr.vmem [resolvable:$true] %s29_s13  ;;  %s43_s16 = int_to_ptr.hbm [resolvable:$true] %s42_s16 }
   0x4   :  { %s1246_s17 = smov 256   ;;  %s1247_s18 = smov 16  }
   0x5   :  { %35 = dma.hbm_to_vmem [thread:$0]  %s28_s11, 4096, %s30_s13, [#allocation3], %s1246_s17, %s1246_s17, %s1247_s18  }
   0x6   :  { %s1248_s19 = smov [#allocation5]   ;;  %s1249_s21 = smov 64  }
   0x7   :  { %s44_s20 = sshll.u32 %s1248_s19, 4  ;;  %s1250_s22 = smov 4   ;;  %s45_s20 = int_to_ptr.vmem [resolvable:$true] %s44_s20 }
   0x8   :  { %50 = dma.hbm_to_vmem [thread:$0]  %s43_s16, 4096, %s45_s20, [#allocation6], %s1249_s21, %s1249_s21, %s1250_s22  }
   0x9   :  { %1239 = dma.done.wait [#allocation3], 4096  }
   0xa   :  { %1240 = vsyncadd [#allocation3], 4294963200 }
   0xb   :  { %1241 = dma.done.wait [#allocation6], 4096  }
   0xc   :  { %1242 = vsyncadd [#allocation6], 4294963200  ;;  %v1084_v0 = vld [vmem:[%s1358_s1 + $0x8] sm:$0xff]  ;;  %v1083_v1 = vld [vmem:[%s1358_s1] sm:$0xff]  ;;  %vm88_vm0 = vcmask 261120   ;;  %s775_s26 = sshll.u32 %s1366_s9, 4  ;;  %s776_s26 = int_to_ptr.hbm [resolvable:$true] %s775_s26 }
   0xd   :  { %v66_v2 = vld [vmem:[%s1357_s0] sm:$0xff]  ;;  %v1115_v4 = vld [vmem:[#allocation2 + $0xec] sm:$0xf0]  ;;  %98 = vmatpush.bf16.msra.mxu0 %v1084_v0  ;;  %v911_v7 = vld [vmem:[#allocation2 + $0xf0] sm:$0xf0]  ;;  %vm766_vm1 = vcmask 257024  }
   0xe   :  { %v909_v3 = vld [vmem:[#allocation2 + $0xe0] sm:$0xf]  ;;  %v1113_v5 = vld [vmem:[#allocation2 + $0xe4] sm:$0xf]  ;;  %v917_v8 = vld [vmem:[#allocation2 + $0xe8] sm:$0xf]  ;;  %v67_v19 = vpack.c.bf16 %v66_v2, %v66_v2 }
   0xf   :  { %v910_v6 = vor.u32 %v1115_v4, %v909_v3  ;;  %v1116_v9 = vld [vmem:[#allocation2 + $0xf4] sm:$0xf0]  ;;  %v914_v10 = vor.u32 %v1113_v5, %v911_v7  ;;  %v1114_v12 = vld [vmem:[#allocation2 + $0xec] sm:$0xf]  ;;  %v919_v13 = vld [vmem:[#allocation2 + $0xf8] sm:$0xf0] }
  0x10   :  { %v918_v11 = vor.u32 %v1116_v9, %v917_v8  ;;  %v893_v14 = vld [vmem:[#allocation2 + $0xc0] sm:$0xf]  ;;  %v922_v15 = vor.u32 %v1114_v12, %v919_v13  ;;  %v1111_v16 = vld [vmem:[#allocation2 + $0xcc] sm:$0xf0]  ;;  %v1109_v17 = vld [vmem:[#allocation2 + $0xc4] sm:$0xf] }
  0x11   :  { %309 = vmatpush.bf16.msra.mxu1 %v910_v6  ;;  %v895_v18 = vld [vmem:[#allocation2 + $0xd0] sm:$0xf0]  ;;  %322 = vmatpush.bf16.msra.mxu2 %v914_v10  ;;  %v894_v20 = vor.u32 %v1111_v16, %v893_v14  ;;  %v901_v22 = vld [vmem:[#allocation2 + $0xc8] sm:$0xf]  ;;  %v1112_v23 = vld [vmem:[#allocation2 + $0xd4] sm:$0xf0] }
  0x12   :  { %335 = vmatpush.bf16.msra.mxu3 %v918_v11  ;;  %v898_v21 = vor.u32 %v1109_v17, %v895_v18  ;;  %v1110_v24 = vld [vmem:[#allocation2 + $0xcc] sm:$0xf]  ;;  %99 = vmatpush.bf16.msra.mxu0 %v1083_v1  ;;  %v902_v25 = vor.u32 %v1112_v23, %v901_v22  ;;  %v903_v26 = vld [vmem:[#allocation2 + $0xd8] sm:$0xf0]  ;;  %v877_v27 = vld [vmem:[#allocation2 + $0xa0] sm:$0xf] }
  0x13   :  { %v1107_v28 = vld [vmem:[#allocation2 + $0xac] sm:$0xf0]  ;;  %v906_v29 = vor.u32 %v1110_v24, %v903_v26  ;;  %v1105_v30 = vld [vmem:[#allocation2 + $0xa4] sm:$0xf]  ;;  %v879_v31 = vld [vmem:[#allocation2 + $0xb0] sm:$0xf0] }
  0x14   :  { %v885_v32 = vld [vmem:[#allocation2 + $0xa8] sm:$0xf]  ;;  %v878_v33 = vor.u32 %v1107_v28, %v877_v27  ;;  %v1108_v34 = vld [vmem:[#allocation2 + $0xb4] sm:$0xf0]  ;;  %v1106_v35 = vld [vmem:[#allocation2 + $0xac] sm:$0xf]  ;;  %v882_v37 = vor.u32 %v1105_v30, %v879_v31 }
  0x15   :  { %310 = vmatpush.bf16.msra.mxu1 %v894_v20  ;;  %v887_v36 = vld [vmem:[#allocation2 + $0xb8] sm:$0xf0]  ;;  %794 = vmatmul.msk.bf16.vlgmr.msra.gmra.mxu0 %vm88_vm0, %v67_v19  ;;  %v861_v38 = vld [vmem:[#allocation2 + $0x80] sm:$0xf]  ;;  %v1103_v39 = vld [vmem:[#allocation2 + $0x8c] sm:$0xf0]  ;;  %v886_v40 = vor.u32 %v1108_v34, %v885_v32 }
  0x16   :  { %348 = vmatpush.bf16.msrb.mxu0 %v922_v15  ;;  %323 = vmatpush.bf16.msra.mxu2 %v898_v21  ;;  %v1101_v41 = vld [vmem:[#allocation2 + $0x84] sm:$0xf]  ;;  %v863_v42 = vld [vmem:[#allocation2 + $0x90] sm:$0xf0]  ;;  %v890_v43 = vor.u32 %v1106_v35, %v887_v36  ;;  %v869_v44 = vld [vmem:[#allocation2 + $0x88] sm:$0xf]  ;;  %v862_v46 = vor.u32 %v1103_v39, %v861_v38 }
  0x17   :  { %336 = vmatpush.bf16.msra.mxu3 %v902_v25  ;;  %v1104_v45 = vld [vmem:[#allocation2 + $0x94] sm:$0xf0]  ;;  %v1102_v47 = vld [vmem:[#allocation2 + $0x8c] sm:$0xf]  ;;  %v871_v48 = vld [vmem:[#allocation2 + $0x98] sm:$0xf0]  ;;  %v866_v49 = vor.u32 %v1101_v41, %v863_v42 }
  0x18   :  { %v845_v50 = vld [vmem:[#allocation2 + $0x60] sm:$0xf]  ;;  %v1099_v51 = vld [vmem:[#allocation2 + $0x6c] sm:$0xf0]  ;;  %v870_v52 = vor.u32 %v1104_v45, %v869_v44  ;;  %v1097_v53 = vld [vmem:[#allocation2 + $0x64] sm:$0xf]  ;;  %v874_v55 = vor.u32 %v1102_v47, %v871_v48 }
  0x19   :  { %311 = vmatpush.bf16.msra.mxu1 %v878_v33  ;;  %v847_v54 = vld [vmem:[#allocation2 + $0x70] sm:$0xf0]  ;;  %v853_v56 = vld [vmem:[#allocation2 + $0x68] sm:$0xf]  ;;  %v1100_v57 = vld [vmem:[#allocation2 + $0x74] sm:$0xf0]  ;;  %v846_v58 = vor.u32 %v1099_v51, %v845_v50 }
  0x1a   :  { %349 = vmatpush.bf16.msrb.mxu0 %v906_v29  ;;  %324 = vmatpush.bf16.msra.mxu2 %v882_v37  ;;  %v1098_v59 = vld [vmem:[#allocation2 + $0x6c] sm:$0xf]  ;;  %v855_v60 = vld [vmem:[#allocation2 + $0x78] sm:$0xf0]  ;;  %v829_v61 = vld [vmem:[#allocation2 + $0x40] sm:$0xf]  ;;  %v850_v62 = vor.u32 %v1097_v53, %v847_v54  ;;  %v854_v0 = vor.u32 %v1100_v57, %v853_v56 }
  0x1b   :  { %337 = vmatpush.bf16.msra.mxu3 %v886_v40  ;;  %v1095_v63 = vld [vmem:[#allocation2 + $0x4c] sm:$0xf0]  ;;  %v1093_v1 = vld [vmem:[#allocation2 + $0x44] sm:$0xf]  ;;  %v831_v2 = vld [vmem:[#allocation2 + $0x50] sm:$0xf0]  ;;  %v858_v3 = vor.u32 %v1098_v59, %v855_v60 }
  0x1c   :  { %v837_v4 = vld [vmem:[#allocation2 + $0x48] sm:$0xf]  ;;  %v1096_v5 = vld [vmem:[#allocation2 + $0x54] sm:$0xf0]  ;;  %v830_v6 = vor.u32 %v1095_v63, %v829_v61  ;;  %v1094_v7 = vld [vmem:[#allocation2 + $0x4c] sm:$0xf]  ;;  %v834_v9 = vor.u32 %v1093_v1, %v831_v2 }
  0x1d   :  { %312 = vmatpush.bf16.msra.mxu1 %v862_v46  ;;  %v839_v8 = vld [vmem:[#allocation2 + $0x58] sm:$0xf0]  ;;  %v838_v10 = vor.u32 %v1096_v5, %v837_v4  ;;  %v813_v12 = vld [vmem:[#allocation2 + $0x20] sm:$0xf]  ;;  %v1091_v13 = vld [vmem:[#allocation2 + $0x2c] sm:$0xf0] }
  0x1e   :  { %350 = vmatpush.bf16.msrb.mxu0 %v890_v43  ;;  %325 = vmatpush.bf16.msra.mxu2 %v866_v49  ;;  %v842_v11 = vor.u32 %v1094_v7, %v839_v8  ;;  %v1089_v14 = vld [vmem:[#allocation2 + $0x24] sm:$0xf]  ;;  %v814_v15 = vor.u32 %v1091_v13, %v813_v12  ;;  %v815_v16 = vld [vmem:[#allocation2 + $0x30] sm:$0xf0]  ;;  %v821_v17 = vld [vmem:[#allocation2 + $0x28] sm:$0xf] }
  0x1f   :  { %338 = vmatpush.bf16.msra.mxu3 %v870_v52  ;;  %v1092_v18 = vld [vmem:[#allocation2 + $0x34] sm:$0xf0]  ;;  %v818_v19 = vor.u32 %v1089_v14, %v815_v16  ;;  %v1090_v21 = vld [vmem:[#allocation2 + $0x2c] sm:$0xf]  ;;  %v823_v22 = vld [vmem:[#allocation2 + $0x38] sm:$0xf0] }
  0x20   :  { %v822_v20 = vor.u32 %v1092_v18, %v821_v17  ;;  %v826_v23 = vor.u32 %v1090_v21, %v823_v22  ;;  %v797_v24 = vld [vmem:[#allocation2] sm:$0xf]  ;;  %v1087_v25 = vld [vmem:[#allocation2 + $0xc] sm:$0xf0]  ;;  %v1085_v26 = vld [vmem:[#allocation2 + $0x4] sm:$0xf] }
  0x21   :  { %313 = vmatpush.bf16.msra.mxu1 %v846_v58  ;;  %v798_v27 = vor.u32 %v1087_v25, %v797_v24  ;;  %v799_v28 = vld [vmem:[#allocation2 + $0x10] sm:$0xf0]  ;;  %v805_v29 = vld [vmem:[#allocation2 + $0x8] sm:$0xf]  ;;  %v1088_v30 = vld [vmem:[#allocation2 + $0x14] sm:$0xf0] }
  0x22   :  { %351 = vmatpush.bf16.msrb.mxu0 %v874_v55  ;;  %326 = vmatpush.bf16.msra.mxu2 %v850_v62  ;;  %v802_v31 = vor.u32 %v1085_v26, %v799_v28  ;;  %v806_v32 = vor.u32 %v1088_v30, %v805_v29  ;;  %v1086_v33 = vld [vmem:[#allocation2 + $0xc] sm:$0xf]  ;;  %v807_v34 = vld [vmem:[#allocation2 + $0x18] sm:$0xf0]  ;;  %v1123_v40 = vld [vmem:[#allocation5 + $0x30] sm:$0xff] }
  0x23   :  { %339 = vmatpush.bf16.msra.mxu3 %v854_v0  ;;  %v810_v35 = vor.u32 %v1086_v33, %v807_v34  ;;  %v1124_v36 = vld [vmem:[#allocation5 + $0x38] sm:$0xff]  ;;  %v1147_v41 = vld [vmem:[#allocation5 + $0xf0] sm:$0xff]  ;;  %v1122_v44 = vld [vmem:[#allocation5 + $0x28] sm:$0xff] }
  0x24   :  { %v1148_v37 = vld [vmem:[#allocation5 + $0xf8] sm:$0xff]  ;;  %v1131_v42 = vld [vmem:[#allocation5 + $0x70] sm:$0xff]  ;;  %v1146_v45 = vld [vmem:[#allocation5 + $0xe8] sm:$0xff] }
  0x25   :  { %314 = vmatpush.bf16.msra.mxu1 %v830_v6  ;;  %v1132_v38 = vld [vmem:[#allocation5 + $0x78] sm:$0xff]  ;;  %v1139_v43 = vld [vmem:[#allocation5 + $0xb0] sm:$0xff]  ;;  %v1130_v46 = vld [vmem:[#allocation5 + $0x68] sm:$0xff] }
  0x26   :  { %352 = vmatpush.bf16.msrb.mxu0 %v858_v3  ;;  %327 = vmatpush.bf16.msra.mxu2 %v834_v9  ;;  %v1140_v39 = vld [vmem:[#allocation5 + $0xb8] sm:$0xff]  ;;  %v1138_v47 = vld [vmem:[#allocation5 + $0xa8] sm:$0xff]  ;;  %v1121_v48 = vld [vmem:[#allocation5 + $0x20] sm:$0xff] }
  0x27   :  { %340 = vmatpush.bf16.msra.mxu3 %v838_v10  ;;  %v1145_v49 = vld [vmem:[#allocation5 + $0xe0] sm:$0xff]  ;;  %v1120_v52 = vld [vmem:[#allocation5 + $0x18] sm:$0xff]  ;;  %v1119_v56 = vld [vmem:[#allocation5 + $0x10] sm:$0xff] }
  0x28   :  { %v1129_v50 = vld [vmem:[#allocation5 + $0x60] sm:$0xff]  ;;  %v1144_v53 = vld [vmem:[#allocation5 + $0xd8] sm:$0xff]  ;;  %v1143_v57 = vld [vmem:[#allocation5 + $0xd0] sm:$0xff] }
  0x29   :  { %315 = vmatpush.bf16.msra.mxu1 %v814_v15  ;;  %v1137_v51 = vld [vmem:[#allocation5 + $0xa0] sm:$0xff]  ;;  %v1128_v54 = vld [vmem:[#allocation5 + $0x58] sm:$0xff]  ;;  %v1118_v0 = vld [vmem:[#allocation5 + $0x8] sm:$0xff] }
  0x2a   :  { %353 = vmatpush.bf16.msrb.mxu0 %v842_v11  ;;  %328 = vmatpush.bf16.msra.mxu2 %v818_v19  ;;  %v1136_v55 = vld [vmem:[#allocation5 + $0x98] sm:$0xff]  ;;  %v1164_v58 = vld [vmem:[%s1359_s2] ss:$0 sm:$0xff]  ;;  %v1142_v1 = vld [vmem:[#allocation5 + $0xc8] sm:$0xff] }
  0x2b   :  { %341 = vmatpush.bf16.msra.mxu3 %v822_v20  ;;  %v1127_v2 = vld [vmem:[#allocation5 + $0x50] sm:$0xff]  ;;  %v1117_v4 = vld [vmem:[#allocation5] sm:$0xff]  ;;  %v1126_v6 = vld [vmem:[#allocation5 + $0x48] sm:$0xff] }
  0x2c   :  { %v1135_v3 = vld [vmem:[#allocation5 + $0x90] sm:$0xff]  ;;  %v1141_v5 = vld [vmem:[#allocation5 + $0xc0] sm:$0xff]  ;;  %v1134_v7 = vld [vmem:[#allocation5 + $0x88] sm:$0xff] }
  0x2d   :  { %316 = vmatpush.bf16.msra.mxu1 %v798_v27  ;;  %v1125_v8 = vld [vmem:[#allocation5 + $0x40] sm:$0xff]  ;;  %v1156_v10 = vld [vmem:[%s1364_s7 + $0x38] sm:$0xff]  ;;  %v1155_v11 = vld [vmem:[%s1364_s7 + $0x30] sm:$0xff] }
  0x2e   :  { %354 = vmatpush.bf16.msrb.mxu0 %v826_v23  ;;  %329 = vmatpush.bf16.msra.mxu2 %v802_v31  ;;  %v1133_v9 = vld [vmem:[#allocation5 + $0x80] sm:$0xff] }
  0x2f   :  { %342 = vmatpush.bf16.msra.mxu3 %v806_v32  ;;  %v139_v12 = vld [vmem:[%s1361_s4] sm:$0xf] }
  0x30   :  { %v141_v13 = vperm.slane %v139_v12, 0  ;;  %v144_v14 = vperm.slane %v139_v12, 3  ;;  %v142_v20 = vperm.slane %v139_v12, 1  ;;  %v143_v22 = vperm.slane %v139_v12, 2 }
  0x31   :  { %629 = vmatpush.bf16.msrb.mxu1 %v1124_v36 }
  0x32   :  { %355 = vmatpush.bf16.msrb.mxu0 %v810_v35  ;;  %642 = vmatpush.bf16.msrb.mxu2 %v1132_v38  ;;  %v1153_v38 = vld [vmem:[%s1364_s7 + $0x20] sm:$0xff] }
  0x33   :  { %655 = vmatpush.bf16.msrb.mxu3 %v1140_v39  ;;  %v1152_v39 = vld [vmem:[%s1364_s7 + $0x18] sm:$0xff] }
  0x35   :  { %630 = vmatpush.bf16.msrb.mxu1 %v1123_v40  ;;  %v1151_v40 = vld [vmem:[%s1364_s7 + $0x10] sm:$0xff] }
  0x36   :  { %668 = vmatpush.bf16.msra.mxu0 %v1148_v37  ;;  %643 = vmatpush.bf16.msrb.mxu2 %v1131_v42  ;;  %v1154_v37 = vld [vmem:[%s1364_s7 + $0x28] sm:$0xff]  ;;  %v1149_v42 = vld [vmem:[%s1364_s7] sm:$0xff] }
  0x37   :  { %656 = vmatpush.bf16.msrb.mxu3 %v1139_v43 }
  0x39   :  { %631 = vmatpush.bf16.msrb.mxu1 %v1122_v44 }
  0x3a   :  { %669 = vmatpush.bf16.msra.mxu0 %v1147_v41  ;;  %644 = vmatpush.bf16.msrb.mxu2 %v1130_v46  ;;  %v1150_v41 = vld [vmem:[%s1364_s7 + $0x8] sm:$0xff] }
  0x3b   :  { %657 = vmatpush.bf16.msrb.mxu3 %v1138_v47 }
  0x3d   :  { %632 = vmatpush.bf16.msrb.mxu1 %v1121_v48 }
  0x3e   :  { %670 = vmatpush.bf16.msra.mxu0 %v1146_v45  ;;  %645 = vmatpush.bf16.msrb.mxu2 %v1129_v50  ;;  %v1165_v45 = vld [vmem:[%s1363_s6] ss:$0 sm:$0xff]  ;;  %s1251_s6 = smov [#allocation7]  }
  0x3f   :  { %658 = vmatpush.bf16.msrb.mxu3 %v1137_v51  ;;  %s773_s24 = sshll.u32 %s1251_s6, 4  ;;  %s774_s24 = int_to_ptr.vmem [resolvable:$true] %s773_s24 }
  0x41   :  { %633 = vmatpush.bf16.msrb.mxu1 %v1120_v52 }
  0x42   :  { %671 = vmatpush.bf16.msra.mxu0 %v1145_v49  ;;  %646 = vmatpush.bf16.msrb.mxu2 %v1128_v54 }
  0x43   :  { %659 = vmatpush.bf16.msrb.mxu3 %v1136_v55 }
  0x45   :  { %634 = vmatpush.bf16.msrb.mxu1 %v1119_v56 }
  0x46   :  { %672 = vmatpush.bf16.msra.mxu0 %v1144_v53  ;;  %647 = vmatpush.bf16.msrb.mxu2 %v1127_v2 }
  0x47   :  { %660 = vmatpush.bf16.msrb.mxu3 %v1135_v3 }
  0x49   :  { %635 = vmatpush.bf16.msrb.mxu1 %v1118_v0 }
  0x4a   :  { %673 = vmatpush.bf16.msra.mxu0 %v1143_v57  ;;  %648 = vmatpush.bf16.msrb.mxu2 %v1126_v6 }
  0x4b   :  { %661 = vmatpush.bf16.msrb.mxu3 %v1134_v7 }
  0x4d   :  { %636 = vmatpush.bf16.msrb.mxu1 %v1117_v4 }
  0x4e   :  { %674 = vmatpush.bf16.msra.mxu0 %v1142_v1  ;;  %649 = vmatpush.bf16.msrb.mxu2 %v1125_v8 }
  0x4f   :  { %662 = vmatpush.bf16.msrb.mxu3 %v1133_v9 }
  0x52   :  { %675 = vmatpush.bf16.msra.mxu0 %v1141_v5 }
  0x92   :  { %v101_v59 = vpop.f32.mrf.mxu0 }
  0x93   :  { %v102_v60 = vadd.f32 %v1164_v58, %v101_v59  ;;  %v1166_v58 = vld [vmem:[%s1365_s8] ss:$0 sm:$0xff] }
  0x95   :  { %v105_v61 = vmax.f32 %v102_v60, 0.0 }
  0x97   :  { %v106_v62 = vpack.c.bf16 %v105_v61, %v105_v61 }
  0x99   :  { %317 = vmatmul.bf16.vlgmr.msra.gmra.mxu1 %v106_v62  ;;  %330 = vmatmul.bf16.vlgmr.msra.gmra.mxu2 %v106_v62 }
  0x9a   :  { %343 = vmatmul.bf16.vlgmr.msra.gmra.mxu3 %v106_v62  ;;  %356 = vmatmul.bf16.vlgmr.msrb.gmra.mxu0 %v106_v62  ;;  %v103_v63 = vpop.f32.mrf.mxu0 }
  0x9b   :  { %751 = vmatpush.bf16.msra.mxu1 %v1156_v10 }
  0x9f   :  { %752 = vmatpush.bf16.msra.mxu1 %v1155_v11 }
  0xa3   :  { %753 = vmatpush.bf16.msra.mxu1 %v1154_v37 }
  0xa7   :  { %754 = vmatpush.bf16.msra.mxu1 %v1153_v38 }
  0xab   :  { %755 = vmatpush.bf16.msra.mxu1 %v1152_v39 }
  0xaf   :  { %756 = vmatpush.bf16.msra.mxu1 %v1151_v40 }
  0xb3   :  { %757 = vmatpush.bf16.msra.mxu1 %v1150_v41 }
  0xb7   :  { %758 = vmatpush.bf16.msra.mxu1 %v1149_v42 }
 0x116   :  { %v318_v15 = vpop.f32.mrf.mxu1 }
 0x117   :  { %v319_v16 = vadd.f32 %v318_v15, %v141_v13  ;;  %v357_v17 = vpop.f32.mrf.mxu0 }
 0x118   :  { %v358_v18 = vadd.f32 %v357_v17, %v144_v14 }
 0x119   :  { %v361_v19 = vmax.f32 %v319_v16, 0.0 }
 0x11a   :  { %v364_v21 = vmax.f32 %v358_v18, 0.0 }
 0x11b   :  { %v365_v23 = vpack.c.bf16 %v361_v19, %v361_v19 }
 0x11c   :  { %v368_v24 = vpack.c.bf16 %v364_v21, %v364_v21  ;;  %v331_v25 = vpop.f32.mrf.mxu2 }
 0x11d   :  { %v332_v26 = vadd.f32 %v331_v25, %v142_v20  ;;  %v344_v27 = vpop.f32.mrf.mxu3  ;;  %637 = vmatmul.bf16.vlgmr.msrb.gmra.mxu1 %v365_v23 }
 0x11e   :  { %v345_v28 = vadd.f32 %v344_v27, %v143_v22  ;;  %676 = vmatmul.bf16.vlgmr.msra.gmra.mxu0 %v368_v24  ;;  %v320_v29 = vpop.f32.mrf.mxu1 }
 0x11f   :  { %v362_v30 = vmax.f32 %v332_v26, 0.0  ;;  %v359_v31 = vpop.f32.mrf.mxu0 }
 0x120   :  { %v363_v32 = vmax.f32 %v345_v28, 0.0 }
 0x121   :  { %v366_v33 = vpack.c.bf16 %v362_v30, %v362_v30 }
 0x122   :  { %v367_v34 = vpack.c.bf16 %v363_v32, %v363_v32 }
 0x123   :  { %650 = vmatmul.bf16.vlgmr.msrb.gmra.mxu2 %v366_v33 }
 0x124   :  { %663 = vmatmul.bf16.vlgmr.msrb.gmra.mxu3 %v367_v34  ;;  %v333_v35 = vpop.f32.mrf.mxu2 }
 0x125   :  { %v346_v36 = vpop.f32.mrf.mxu3 }
 0x19a   :  { %v638_v43 = vpop.f32.mrf.mxu1 }
 0x19b   :  { %v677_v44 = vpop.f32.mrf.mxu0  ;;  %v639_v48 = vadd.f32 %v1165_v45, %v638_v43 }
 0x1a2   :  { %v640_v46 = vpop.f32.mrf.mxu1 }
 0x1a3   :  { %v679_v47 = vpop.f32.mrf.mxu0 }
 0x1a6   :  { %v651_v49 = vpop.f32.mrf.mxu2 }
 0x1a7   :  { %v652_v50 = vadd.f32 %v651_v49, %v639_v48  ;;  %v664_v51 = vpop.f32.mrf.mxu3 }
 0x1a9   :  { %v665_v52 = vadd.f32 %v664_v51, %v652_v50 }
 0x1ab   :  { %v678_v53 = vadd.f32 %v677_v44, %v665_v52 }
 0x1ad   :  { %v681_v54 = vmax.f32 %v678_v53, 0.0 }
 0x1ae   :  { %v653_v55 = vpop.f32.mrf.mxu2 }
 0x1af   :  { %v682_v56 = vpack.c.bf16 %v681_v54, %v681_v54  ;;  %v666_v57 = vpop.f32.mrf.mxu3 }
 0x1b1   :  { %759 = vmatmul.bf16.vlgmr.msra.gmra.mxu1 %v682_v56 }
 0x22e   :  { %v760_v59 = vpop.f32.mrf.mxu1 }
 0x22f   :  { %v761_v60 = vadd.f32 %v1166_v58, %v760_v59 }
 0x231   :  { %v764_v61 = vmax.f32 %v761_v60, 0.0 }
 0x233   :  { %v765_v62 = vpack.c.bf16 %v764_v61, %v764_v61 }
 0x235   :  { %767 = vst.msk [vmem:[#allocation7] sm:$0xf] %vm766_vm1, %v765_v62 }
 0x236   :  { %v762_v63 = vpop.f32.mrf.mxu1  ;;  %778 = dma.vmem_to_hbm [thread:$0]  %s774_s24, 64, %s776_s26, [#allocation4]  }
 0x237   :  { %1243 = dma.done.wait [#allocation4], 64  }
 0x238   :  { %1244 = vsyncadd [#allocation4], 4294967232 }
 0x239   :  { %783 = vsyncpa [#allocation3], 1 }
 0x23a   :  { %784 = vsyncpa [#allocation6], 1 }
 0x23b   :  { %785 = vsyncpa [#allocation4], 1 }

</bundles_post_ra>
